<compile_context>
chip_gen: v7x
topology: tpu7x:2x2x1
jax: 0.10.0
libtpu: 0.0.40
codegen_flags: <defaults>
</compile_context>

<pallas_src>
import functools
import math

import jax
import jax.numpy as jnp
from jax.experimental import pallas as pl
from jax.experimental.pallas import tpu as pltpu

_MIB = 1024 * 1024


def _vmem_capacity_bytes():
    """Physical VMEM of the local TPU generation; conservative fallback."""
    try:
        info = pltpu.get_tpu_info()
        cap = getattr(info, "vmem_capacity_bytes", None)
        if cap:
            return int(cap)
    except Exception:
        pass
    return 64 * _MIB  # v7x-sized conservative default


def _pick_d_tile(Dk):
    # Last dim of a block must be a multiple of 128 or the full dim.
    if Dk % 128 != 0 or Dk <= 512:
        return Dk
    for cand in (512, 384, 256, 128):
        if Dk % cand == 0:
            return cand
    return Dk


def _pick_batch_tile(B, *, want_split):
    # Output block is (Bt, Dt); Bt must be a multiple of 8 or the full dim.
    if B % 8 != 0:
        return B
    cands = [c for c in (64, 32, 16, 8) if B % c == 0]
    if not cands:
        return B
    if want_split:
        # Guarantee >= 2 iterations on a parallel grid axis (v7x has 2 TCs).
        for c in cands:
            if B // c >= 2:
                return c
    return cands[0]


def _pick_time_tile(*, Bt, Tk, Dt, itemsize, budget, max_tt=None):
    # Honest VMEM accounting: double-buffered input, possible f32 upcast temp
    # (sub-f32 inputs), f32 accumulator scratch, double-buffered f32 output.
    upcast = 4 if itemsize < 4 else 0

    def tile_bytes(tt):
        inp = 2 * Bt * tt * Dt * itemsize
        tmp = Bt * tt * Dt * upcast
        acc = Bt * Dt * 4
        out = 2 * Bt * Dt * 4
        return inp + tmp + acc + out

    def ok(tt):
        return tile_bytes(tt) <= budget and (max_tt is None or tt <= max_tt)

    # Prefer the whole time axis in one step (no accumulator/epilogue path).
    if ok(Tk):
        return Tk
    # Second-to-last block dim must be a multiple of 8 (or the full dim).
    for cand in (65536, 32768, 16384, 8192, 4096, 2048, 1024, 512, 256, 128,
                 64, 32, 16, 8):
        if cand < Tk and Tk % cand == 0 and ok(cand):
            return cand
    # Fallback: smallest multiple-of-8 divisor (Bt/Dt caps bound its size);
    # vmem_limit_bytes gives headroom if it slightly exceeds the budget.
    for cand in (8, 16, 24, 32, 40, 48, 56, 64):
        if cand < Tk and Tk % cand == 0:
            return cand
    return Tk


def time_att(x, w1=None, w2=None, *, max_time_tile=None):
    """Time_att forward.  x: (B, T, D); w1: (D, D); w2: (1, D).

    softmax over the size-1 last dim makes beta == 1.0 exactly, so w1/w2 never
    influence the output (accepted only for interface parity).  Result is
    exactly mean(x, axis=1) followed by PyTorch-style .squeeze().
    `max_time_tile` is a test/tuning knob that caps the time tile.
    """
    B, T, D = x.shape
    itemsize = x.dtype.itemsize

    # Lane packing: when D < 128, fold k consecutive time steps into the lane
    # dim (pure row-major reshape) so vregs / DMAs / stores are lane-dense.
    k = 1
    if D < 128 and 128 % D == 0:
        k = 128 // D
        while k > 1 and T % k != 0:
            k //= 2
    Tk, Dk = T // k, D * k
    x_view = x.reshape(B, Tk, Dk) if k > 1 else x

    Dt = _pick_d_tile(Dk)
    n_d = Dk // Dt
    Bt = _pick_batch_tile(B, want_split=(n_d < 2))
    n_b = B // Bt

    cap = _vmem_capacity_bytes()
    budget = max(16 * _MIB, min(cap // 2, 64 * _MIB))       # ~64MiB v5e/v6e, ~32MiB v7x
    vmem_limit = int(min(cap * 3 // 4, 2 * budget))          # explicit scoped limit

    Tt = _pick_time_tile(Bt=Bt, Tk=Tk, Dt=Dt, itemsize=itemsize,
                         budget=budget, max_tt=max_time_tile)
    n_t = Tk // Tt

    inv_t = 1.0 / T

    if n_t == 1:
        # Single time step per block: no accumulator, no epilogue branches.
        def kernel(x_ref, o_ref):
            o_ref[...] = jnp.sum(x_ref[...], axis=1, dtype=jnp.float32) * inv_t

        scratch_shapes = []
    else:
        def kernel(x_ref, o_ref, acc_ref):
            t = pl.program_id(2)

            @pl.when(t == 0)
            def _():
                acc_ref[...] = jnp.zeros_like(acc_ref)

            # Sum over the time axis of this tile, accumulating in f32 without
            # materializing a full f32 copy of the input tile.
            acc_ref[...] += jnp.sum(x_ref[...], axis=1, dtype=jnp.float32)

            @pl.when(t == pl.num_programs(2) - 1)
            def _():
                o_ref[...] = acc_ref[...] * inv_t

        scratch_shapes = [pltpu.VMEM((Bt, Dt), jnp.float32)]

    cost = pl.CostEstimate(
        flops=B * T * D,
        transcendentals=0,
        bytes_accessed=B * T * D * itemsize + B * Dk * 4,
    )

    out = pl.pallas_call(
        kernel,
        out_shape=jax.ShapeDtypeStruct((B, Dk), jnp.float32),
        grid_spec=pltpu.PrefetchScalarGridSpec(
            num_scalar_prefetch=0,
            grid=(n_b, n_d, n_t),
            in_specs=[pl.BlockSpec((Bt, Tt, Dt), lambda b, d, t: (b, t, d))],
            out_specs=pl.BlockSpec((Bt, Dt), lambda b, d, t: (b, d)),
            scratch_shapes=scratch_shapes,
        ),
        compiler_params=pltpu.CompilerParams(
            dimension_semantics=("parallel", "parallel", "arbitrary"),
            vmem_limit_bytes=vmem_limit),
        cost_estimate=cost,
    )(x_view)

    if k > 1:
        # Finish the lane fold: each output lane j*D + d holds the mean
        # contribution of time steps with phase j; sum the k phases.
        # (Tiny (B, k, D) op in the wrapper — layout plumbing, not compute.)
        out = out.reshape(B, k, D).sum(axis=1)

    out = out.astype(x.dtype)
    # Matches PyTorch .squeeze() on the pooled (B, 1, D) result: drops every
    # size-1 dim (including the batch dim when B == 1).
    return jnp.squeeze(out)


def _reference(x, w1, w2):
    # Full reference INCLUDING the (mathematically dead) attention path, to
    # verify the kernel preserves the module's exact semantics.
    y = x @ w1.T                                   # linear1
    y = jnp.tanh(y) @ w2.T                         # linear2 -> (B, T, 1)
    beta = jax.nn.softmax(y, axis=-1)              # identically 1.0
    c = beta * x
    return jnp.squeeze(jnp.mean(c, axis=1, keepdims=True))


def _make_inputs(key, B, T, D):
    kx, k1, k2 = jax.random.split(key, 3)
    x = jax.random.normal(kx, (B, T, D), dtype=jnp.float32)
    # nn.Linear default init: U(-1/sqrt(fan_in), 1/sqrt(fan_in))
    bound = 1.0 / math.sqrt(D)
    w1 = jax.random.uniform(k1, (D, D), jnp.float32, -bound, bound)
    w2 = jax.random.uniform(k2, (1, D), jnp.float32, -bound, bound)
    return x, w1, w2


if __name__ == "__main__":
    key = jax.random.PRNGKey(0)
    k_a, k_b = jax.random.split(key)

    # Case 1: small shape from the spec (D < 128 -> lane-packed fold path).
    B, T, D = 2, 8, 32
    x, w1, w2 = _make_inputs(k_a, B, T, D)
    out = jax.block_until_ready(time_att(x, w1, w2))
    ref = _reference(x, w1, w2)
    assert out.shape == ref.shape == (B, D), (out.shape, ref.shape)
    assert jnp.allclose(out, ref, atol=1e-5, rtol=1e-5), "mismatch vs reference (case 1)"

    # Case 2: exercise the tiled-time accumulator path (forced via max_time_tile).
    B2, T2, D2 = 8, 16, 256
    x2, w12, w22 = _make_inputs(k_b, B2, T2, D2)
    out2 = jax.block_until_ready(time_att(x2, w12, w22, max_time_tile=8))
    ref2 = _reference(x2, w12, w22)
    assert out2.shape == ref2.shape == (B2, D2), (out2.shape, ref2.shape)
    assert jnp.allclose(out2, ref2, atol=1e-5, rtol=1e-5), "mismatch vs reference (case 2)"

    print("KERNEL_OK")
</pallas_src>

<mosaic_0001>
module attributes {stable_mosaic.version = 11 : i64} {
  func.func @kernel(%arg0: i32, %arg1: i32, %arg2: i32, %arg3: memref<2x2x128xf32, #tpu.memory_space<vmem>>, %arg4: memref<2x128xf32, #tpu.memory_space<vmem>>) attributes {dimension_semantics = [#tpu.dimension_semantics<parallel>, #tpu.dimension_semantics<parallel>, #tpu.dimension_semantics<arbitrary>], iteration_bounds = array<i64: 1, 1, 1>, scalar_prefetch = 0 : i64, scratch_operands = 0 : i64, tpu.core_type = #tpu.core_type<tc>, window_params = [{transform_indices = @transform_0, window_bounds = array<i64: 2, 2, 128>}, {transform_indices = @transform_1, window_bounds = array<i64: 2, 128>}]} {
    %c0 = arith.constant 0 : index
    %c0_0 = arith.constant 0 : index
    %c0_1 = arith.constant 0 : index
    %0 = vector.load %arg3[%c0, %c0_0, %c0_1] : memref<2x2x128xf32, #tpu.memory_space<vmem>>, vector<2x2x128xf32>
    %cst = arith.constant dense<0.000000e+00> : vector<2x128xf32>
    %1 = vector.multi_reduction <add>, %0, %cst [1] : vector<2x2x128xf32> to vector<2x128xf32>
    %cst_2 = arith.constant 1.250000e-01 : f32
    %2 = vector.broadcast %cst_2 : f32 to vector<2x128xf32>
    %3 = arith.mulf %1, %2 : vector<2x128xf32>
    %c0_3 = arith.constant 0 : index
    %c0_4 = arith.constant 0 : index
    %4 = vector.load %arg4[%c0_3, %c0_4] : memref<2x128xf32, #tpu.memory_space<vmem>>, vector<2x128xf32>
    tpu.vector_store %arg4[%c0_3, %c0_4], %3 {strides = array<i32>} : memref<2x128xf32, #tpu.memory_space<vmem>>, vector<2x128xf32>,
    return
  }
  func.func @transform_0(%arg0: i32, %arg1: i32, %arg2: i32) -> (i32, i32, i32) {
    %c0_i32 = arith.constant 0 : i32
    return %arg0, %arg2, %arg1 : i32, i32, i32
  }
  func.func @transform_1(%arg0: i32, %arg1: i32, %arg2: i32) -> (i32, i32) {
    %c0_i32 = arith.constant 0 : i32
    return %arg0, %arg1 : i32, i32
  }
}

</mosaic_0001>

<bundles_post_ra>
// kernel: tpu_custom_call.1
= control target key start
LH: loop header
LB: loop body
LE: loop exit
PB: predicated region body
PF: predicated region fallthrough
CT: control target
= control target key end

     0   :  { %6 = vsyncpa [#allocation3], 0  ;;  %s153_s0 = inlined_call_operand.hbm [shape: f32[2,2,128], index: 0, kind: input, shape index: {}]   ;;  %s154_s1 = inlined_call_operand.hbm [shape: f32[2,128], index: 1, kind: output, shape index: {}]  }
   0x1   :  { %7 = vsyncpa [#allocation4], 0  ;;  %s115_s6 = smov [#allocation2]   ;;  %s67_s10 = scalar_lea.hbm %s153_s0, 64 }
   0x2   :  { %s13_s7 = sshll.u32 %s115_s6, 4  ;;  %p68_p0 = scmp.ne.s32.totalorder %s153_s0, %s67_s10  ;;  %s14_s7 = int_to_ptr.vmem [resolvable:$true] %s13_s7 }
   0x3   :  { %p71_p1 = scmp.lt.u32.totalorder %s67_s10, %s153_s0 }
   0x5   :  { %p73_p2 = pnand %p71_p1, %p68_p0 }
   0x7   :  { %76 = shalt.err (!%p73_p2)
}
   0x8   :  { %s77_s15 = scalar_lea.vmem %s14_s7, 64  ;;  %p82_p4 = scmp.lt.s32.totalorder %s14_s7, %s14_s7 }
   0x9   :  { %p78_p3 = scmp.ne.s32.totalorder %s14_s7, %s77_s15  ;;  %p83_p5 = scmp.lt.s32.totalorder %s77_s15, %s77_s15 }
   0xb   :  { %p84_p6 = por %p83_p5, %p82_p4 }
   0xd   :  { %p85_p7 = pnand %p84_p6, %p78_p3 }
   0xf   :  { %88 = shalt.err (!%p85_p7)
}
  0x10   :  { %s116_s16 = smov 32   ;;  %s117_s17 = smov 2  }
  0x11   :  { %19 = dma.hbm_to_vmem [thread:$0]  %s153_s0, 64, %s14_s7, [#allocation3], %s116_s16, %s116_s16, %s117_s17  }
  0x12   :  { %111 = dma.done.wait [#allocation3], 64  }
  0x13   :  { %112 = vsyncadd [#allocation3], 4294967232  ;;  %vm25_vm0 = vcmask 1041408   ;;  %v23_v0 = vld [vmem:[#allocation2] sm:$0x3]  ;;  %s118_s0 = smov [#allocation5]  }
  0x14   :  { %v24_v1 = vld [vmem:[#allocation2 + $0x2] sm:$0x3]  ;;  %v26_v2 = vsel %vm25_vm0, %v23_v0, 0.0  ;;  %s54_s20 = sshll.u32 %s118_s0, 4  ;;  %vm44_vm1 = vcmask 1041409   ;;  %s55_s20 = int_to_ptr.vmem [resolvable:$true] %s54_s20 }
  0x15   :  { %v33_v3 = vsel %vm25_vm0, %v24_v1, 0.0  ;;  %v27_v4 = vrot.slane %v26_v2, 4  ;;  %s89_s21 = scalar_lea.vmem %s55_s20, 32  ;;  %p94_p9 = scmp.lt.s32.totalorder %s55_s20, %s55_s20 }
  0x16   :  { %v34_v5 = vrot.slane %v33_v3, 4  ;;  %p90_p8 = scmp.ne.s32.totalorder %s55_s20, %s89_s21  ;;  %p95_p10 = scmp.lt.s32.totalorder %s89_s21, %s89_s21 }
  0x17   :  { %v28_v6 = vadd.f32 %v27_v4, %v26_v2 }
  0x18   :  { %v35_v7 = vadd.f32 %v34_v5, %v33_v3  ;;  %p96_p11 = por %p95_p10, %p94_p9 }
  0x19   :  { %v29_v8 = vrot.slane %v28_v6, 2 }
  0x1a   :  { %v36_v9 = vrot.slane %v35_v7, 2  ;;  %p97_p12 = pnand %p96_p11, %p90_p8 }
  0x1b   :  { %v30_v10 = vadd.f32 %v29_v8, %v28_v6 }
  0x1c   :  { %v37_v11 = vadd.f32 %v36_v9, %v35_v7 }
  0x1d   :  { %v31_v12 = vrot.slane %v30_v10, 1 }
  0x1e   :  { %v38_v13 = vrot.slane %v37_v11, 1 }
  0x1f   :  { %v32_v14 = vadd.f32 %v31_v12, %v30_v10 }
  0x20   :  { %v39_v15 = vadd.f32 %v38_v13, %v37_v11 }
  0x21   :  { %v40_v16 = vmul.f32 0.125, %v32_v14 }
  0x22   :  { %v41_v17 = vmul.f32 0.125, %v39_v15 }
  0x24   :  { %v45_v18 = vsel %vm44_vm1, %v41_v17, %v40_v16 }
  0x25   :  { %47 = vst [vmem:[#allocation5] sm:$0x3] %v45_v18 }
  0x26   :  { %100 = shalt.err (!%p97_p12)
}
  0x27   :  { %s101_s24 = scalar_lea.hbm %s154_s1, 32 }
  0x28   :  { %p102_p13 = scmp.ne.s32.totalorder %s154_s1, %s101_s24  ;;  %p105_p0 = scmp.lt.u32.totalorder %s101_s24, %s154_s1 }
  0x2a   :  { %p107_p1 = pnand %p105_p0, %p102_p13 }
  0x2c   :  { %110 = shalt.err (!%p107_p1)
}
  0x2d   :  { %57 = dma.vmem_to_hbm [thread:$0]  %s55_s20, 32, %s154_s1, [#allocation4]  }
  0x2e   :  { %113 = dma.done.wait [#allocation4], 32  }
  0x2f   :  { %114 = vsyncadd [#allocation4], 4294967264 }
  0x30   :  { %61 = vsyncpa [#allocation3], 1 }
  0x31   :  { %62 = vsyncpa [#allocation4], 1 }

</bundles_post_ra>
